<compile_context>
chip_gen: v6e
topology: v6e:2x2x1
jax: 0.10.0
libtpu: 0.0.40
codegen_flags: <defaults>
</compile_context>

<pallas_src>
import functools
import math
from typing import NamedTuple

import jax
import jax.numpy as jnp
from jax.experimental import pallas as pl
from jax.experimental.pallas import tpu as pltpu


# ----------------------------------------------------------------------------------------------
# helpers
# ----------------------------------------------------------------------------------------------
def _round_up(a, b):
    return (a + b - 1) // b * b


def _sigmoid_kernel(v):
    # sigmoid(v) = 1 / (1 + exp(-v)); exp and the approx reciprocal both land on the EUP slot,
    # keeping the VALU (the binding slot at these matmul sizes) free.
    return pl.reciprocal(1.0 + jnp.exp(-v), approx=True)


def _sigmoid_ref(v):
    return 1.0 / (1.0 + jnp.exp(-v))


def _pick_b_tile(batch):
    """Batch tile: multiple of 16 (bf16 sublane packing); >=2 tiles when the batch is large
    enough so the 'parallel' grid axis gives both v7x TensorCores work."""
    b16 = _round_up(max(batch, 1), 16)
    if b16 <= 16:
        return b16
    if b16 <= 256:
        return _round_up((b16 + 1) // 2, 16)
    return 128


def _vmem_limit_bytes(resident_bytes, streamed_bytes_per_step):
    """Per-generation VMEM budget from the actual chip (128 MiB on v5e/v6e, 64 MiB on v7x),
    with headroom left for compiler-internal scratch and semaphores."""
    try:
        phys = int(pltpu.get_tpu_info().vmem_capacity_bytes)
    except Exception:  # conservative fallback if the query is unavailable
        phys = 64 * 1024 * 1024
    cap = int(phys * 0.85)
    est = int(resident_bytes + 2 * streamed_bytes_per_step + (4 << 20))
    return max(32 * 1024 * 1024, min(cap, est))


def _pad_cast_2d(a, rows, cols, dtype):
    r0, c0 = a.shape
    a = a.astype(dtype)
    if (r0, c0) == (rows, cols):
        return a
    return jnp.zeros((rows, cols), dtype).at[:r0, :c0].set(a)


# ----------------------------------------------------------------------------------------------
# one-time weight preparation (hoisted out of the per-step path)
# ----------------------------------------------------------------------------------------------
class GRUWeights(NamedTuple):
    wx3: jax.Array   # (D_pad, 3*H_pad) mxu_dtype : [Wr | Wz | Wn]^T for x
    wh3: jax.Array   # (H_pad, 3*H_pad) mxu_dtype : [Ur | Uz | Un]^T for hidden
    bx3: jax.Array   # (1, 3*H_pad) f32
    bh3: jax.Array   # (1, 3*H_pad) f32


def prepare_gru_weights(wx, bx, wh, bh, *, mxu_dtype=jnp.bfloat16):
    """Repack PyTorch-layout parameters (wx/wh: (3H, D), bx/bh: (3H,)) into lane-aligned,
    zero-padded, transposed MXU operands. Each gate occupies its own whole 128-lane block so
    in-kernel gate slices and the hy store are unmasked / lane-dense."""
    three_h, d = wx.shape
    h = three_h // 3
    assert wx.shape == (3 * h, d) and wh.shape == (3 * h, d)
    assert bx.shape == (3 * h,) and bh.shape == (3 * h,)
    assert d == h, "module applies h2h = Linear(input_size, 3H) to hidden -> needs D == H"

    d_pad = _round_up(d, 128)
    h_pad = _round_up(h, 128)
    f32 = jnp.float32

    def pack_w(w, rows, rows_pad):
        out = jnp.zeros((rows_pad, 3 * h_pad), f32)
        for g in range(3):                              # gate g -> lanes [g*h_pad, g*h_pad + h)
            out = out.at[:rows, g * h_pad:g * h_pad + h].set(
                w[g * h:(g + 1) * h].T.astype(f32))
        return out.astype(mxu_dtype)

    def pack_b(b):
        out = jnp.zeros((1, 3 * h_pad), f32)
        for g in range(3):
            out = out.at[0, g * h_pad:g * h_pad + h].set(b[g * h:(g + 1) * h])
        return out

    return GRUWeights(pack_w(wx, d, d_pad), pack_w(wh, h, h_pad), pack_b(bx), pack_b(bh))


# ----------------------------------------------------------------------------------------------
# kernels
# ----------------------------------------------------------------------------------------------
def _gru_math(x_bf, h32, wx_ref, wh_ref, bx_ref, bh_ref, h_pad):
    """Shared gate math: two wide GEMMs + VPU combine; f32 accumulation and f32 blend."""
    gx = jnp.dot(x_bf, wx_ref[...], preferred_element_type=jnp.float32) + bx_ref[...]
    gh = jnp.dot(h32.astype(wh_ref.dtype), wh_ref[...],
                 preferred_element_type=jnp.float32) + bh_ref[...]
    r = _sigmoid_kernel(gx[:, :h_pad] + gh[:, :h_pad])
    z = _sigmoid_kernel(gx[:, h_pad:2 * h_pad] + gh[:, h_pad:2 * h_pad])
    n = jnp.tanh(gx[:, 2 * h_pad:] + r * gh[:, 2 * h_pad:])
    return n + z * (h32 - n)


def _gru_cell_kernel(x_ref, h_ref, wx_ref, wh_ref, bx_ref, bh_ref, hy_ref, *, h_pad):
    h32 = h_ref[...]                                    # single f32 hidden stream
    hy = _gru_math(x_ref[...], h32, wx_ref, wh_ref, bx_ref, bh_ref, h_pad)
    hy_ref[...] = hy.astype(hy_ref.dtype)


def _gru_seq_kernel(x_ref, h0_ref, wx_ref, wh_ref, bx_ref, bh_ref, hy_ref, h_scr, *, h_pad):
    @pl.when(pl.program_id(1) == 0)                     # t == 0: load initial hidden
    def _():
        h_scr[...] = h0_ref[...]
    h32 = h_scr[...]                                    # f32 hidden carried in VMEM scratch
    hy = _gru_math(x_ref[...], h32, wx_ref, wh_ref, bx_ref, bh_ref, h_pad)
    h_scr[...] = hy
    hy_ref[...] = hy.astype(hy_ref.dtype)


# ----------------------------------------------------------------------------------------------
# wrappers
# ----------------------------------------------------------------------------------------------
def _gru_cell_call(x, hidden, w, b_tile, single_buffer):
    B, D = x.shape
    H = hidden.shape[1]
    d_pad, h_pad = w.wx3.shape[0], w.wh3.shape[0]
    assert w.wx3.shape[1] == 3 * h_pad and D <= d_pad and H <= h_pad

    if b_tile is None:
        b_tile = _pick_b_tile(B)
    B_pad = _round_up(B, b_tile)
    nb = B_pad // b_tile

    mxu_dtype = w.wx3.dtype
    x_p = _pad_cast_2d(x, B_pad, d_pad, mxu_dtype)
    h_p = _pad_cast_2d(hidden, B_pad, h_pad, jnp.float32)

    wbytes = jnp.dtype(mxu_dtype).itemsize
    resident = (d_pad + h_pad) * 3 * h_pad * wbytes + 2 * 3 * h_pad * 4
    if not single_buffer:
        resident *= 2
    streamed = b_tile * (d_pad * wbytes + h_pad * 4 + h_pad * jnp.dtype(hidden.dtype).itemsize)
    vmem_limit = _vmem_limit_bytes(resident, streamed)

    def const_spec(shape):
        if single_buffer:
            return pl.BlockSpec(shape, lambda i: (0, 0), pipeline_mode=pl.Buffered(1))
        return pl.BlockSpec(shape, lambda i: (0, 0))

    hy_pad = pl.pallas_call(
        functools.partial(_gru_cell_kernel, h_pad=h_pad),
        out_shape=jax.ShapeDtypeStruct((B_pad, h_pad), hidden.dtype),
        grid=(nb,),
        in_specs=[
            pl.BlockSpec((b_tile, d_pad), lambda i: (i, 0)),   # x  (bf16, streamed per tile)
            pl.BlockSpec((b_tile, h_pad), lambda i: (i, 0)),   # hidden (f32, single stream)
            const_spec((d_pad, 3 * h_pad)),                    # [Wr|Wz|Wn]^T  (VMEM-resident)
            const_spec((h_pad, 3 * h_pad)),                    # [Ur|Uz|Un]^T  (VMEM-resident)
            const_spec((1, 3 * h_pad)),                        # bx
            const_spec((1, 3 * h_pad)),                        # bh
        ],
        out_specs=pl.BlockSpec((b_tile, h_pad), lambda i: (i, 0)),
        compiler_params=pltpu.CompilerParams(
            dimension_semantics=("parallel",),
            vmem_limit_bytes=int(vmem_limit),
        ),
    )(x_p, h_p, w.wx3, w.wh3, w.bx3, w.bh3)
    return hy_pad[:B, :H]


def gru_cell(x, hidden, weights: GRUWeights, *, b_tile=None, single_buffer_weights=True):
    """Single GRU cell step. x: (B, D), hidden: (B, H); returns hy: (B, H) in hidden.dtype."""
    if single_buffer_weights:
        try:
            return _gru_cell_call(x, hidden, weights, b_tile, True)
        except Exception:
            # TODO(synk): drop this fallback once pl.Buffered(1) single-buffering of resident
            # weights is supported by the deployed JAX/Mosaic everywhere.
            pass
    return _gru_cell_call(x, hidden, weights, b_tile, False)


def _gru_seq_call(x_seq, hidden0, w, b_tile, single_buffer):
    T, B, D = x_seq.shape
    H = hidden0.shape[1]
    d_pad, h_pad = w.wx3.shape[0], w.wh3.shape[0]
    assert D <= d_pad and H <= h_pad

    if b_tile is None:
        b_tile = _pick_b_tile(B)
    B_pad = _round_up(B, b_tile)
    nb = B_pad // b_tile

    mxu_dtype = w.wx3.dtype
    x_p = jnp.zeros((T, B_pad, d_pad), mxu_dtype).at[:, :B, :D].set(x_seq.astype(mxu_dtype))
    h0_p = _pad_cast_2d(hidden0, B_pad, h_pad, jnp.float32)

    wbytes = jnp.dtype(mxu_dtype).itemsize
    resident = (d_pad + h_pad) * 3 * h_pad * wbytes + 2 * 3 * h_pad * 4
    if not single_buffer:
        resident *= 2
    resident += 3 * b_tile * h_pad * 4                   # h scratch + double-buffered h0 tile
    streamed = b_tile * (d_pad * wbytes + h_pad * jnp.dtype(hidden0.dtype).itemsize)
    vmem_limit = _vmem_limit_bytes(resident, streamed)

    def const_spec(shape):
        if single_buffer:
            return pl.BlockSpec(shape, lambda i, t: (0, 0), pipeline_mode=pl.Buffered(1))
        return pl.BlockSpec(shape, lambda i, t: (0, 0))

    hy_pad = pl.pallas_call(
        functools.partial(_gru_seq_kernel, h_pad=h_pad),
        out_shape=jax.ShapeDtypeStruct((T, B_pad, h_pad), hidden0.dtype),
        grid=(nb, T),                                    # time is the inner, "arbitrary" axis
        in_specs=[
            pl.BlockSpec((None, b_tile, d_pad), lambda i, t: (t, i, 0)),  # x_t (streamed)
            pl.BlockSpec((b_tile, h_pad), lambda i, t: (i, 0)),           # h0 (read at t == 0)
            const_spec((d_pad, 3 * h_pad)),                               # weights: fetched once
            const_spec((h_pad, 3 * h_pad)),
            const_spec((1, 3 * h_pad)),
            const_spec((1, 3 * h_pad)),
        ],
        out_specs=pl.BlockSpec((None, b_tile, h_pad), lambda i, t: (t, i, 0)),
        scratch_shapes=[pltpu.VMEM((b_tile, h_pad), jnp.float32)],        # carried hidden state
        compiler_params=pltpu.CompilerParams(
            dimension_semantics=("parallel", "arbitrary"),
            vmem_limit_bytes=int(vmem_limit),
        ),
    )(x_p, h0_p, w.wx3, w.wh3, w.bx3, w.bh3)
    return hy_pad[:, :B, :H]


def gru_sequence(x_seq, hidden0, weights: GRUWeights, *, b_tile=None, single_buffer_weights=True):
    """Runs the GRU cell over a whole (T, B, D) sequence inside ONE pallas_call: the time loop
    is a grid axis, weights are DMA'd from HBM once per sequence, and the hidden state is
    carried in VMEM scratch. Returns all hidden states (T, B, H)."""
    if single_buffer_weights:
        try:
            return _gru_seq_call(x_seq, hidden0, weights, b_tile, True)
        except Exception:
            pass
    return _gru_seq_call(x_seq, hidden0, weights, b_tile, False)


# ----------------------------------------------------------------------------------------------
# plain-JAX reference mirroring the PyTorch forward
# ----------------------------------------------------------------------------------------------
def gru_cell_reference(x, hidden, wx, bx, wh, bh, mxu_dtype=jnp.float32):
    xm, hm = x.astype(mxu_dtype), hidden.astype(mxu_dtype)
    wxm, whm = wx.astype(mxu_dtype), wh.astype(mxu_dtype)
    gate_x = jnp.dot(xm, wxm.T, preferred_element_type=jnp.float32) + bx
    gate_h = jnp.dot(hm, whm.T, preferred_element_type=jnp.float32) + bh
    H = hidden.shape[1]
    i_r, i_i, i_n = gate_x[:, :H], gate_x[:, H:2 * H], gate_x[:, 2 * H:]
    h_r, h_i, h_n = gate_h[:, :H], gate_h[:, H:2 * H], gate_h[:, 2 * H:]
    r = _sigmoid_ref(i_r + h_r)
    z = _sigmoid_ref(i_i + h_i)
    n = jnp.tanh(i_n + r * h_n)
    return n + z * (hidden.astype(jnp.float32) - n)


if __name__ == "__main__":
    # Small shapes consistent with the module: input_size == hidden_size (see note above).
    batch, input_size, hidden_size, seq_len = 8, 32, 32, 8

    key = jax.random.PRNGKey(0)
    kx, kh, kwx, kbx, kwh, kbh, ks = jax.random.split(key, 7)
    std = 1.0 / math.sqrt(hidden_size)

    # nn.Linear(input_size, 3*hidden_size): weight (3H, D), bias (3H,)
    wx = jax.random.uniform(kwx, (3 * hidden_size, input_size), jnp.float32, -std, std)
    bx = jax.random.uniform(kbx, (3 * hidden_size,), jnp.float32, -std, std)
    wh = jax.random.uniform(kwh, (3 * hidden_size, input_size), jnp.float32, -std, std)
    bh = jax.random.uniform(kbh, (3 * hidden_size,), jnp.float32, -std, std)

    x = jax.random.normal(kx, (batch, input_size), jnp.float32)
    hidden = jax.random.normal(kh, (batch, hidden_size), jnp.float32)

    # One-time weight repack (hoisted out of the per-step path).
    weights = prepare_gru_weights(wx, bx, wh, bh)

    # ---- single-step cell ----------------------------------------------------------------
    hy = jax.block_until_ready(gru_cell(x, hidden, weights))
    assert hy.shape == (batch, hidden_size)
    ref_bf16 = gru_cell_reference(x, hidden, wx, bx, wh, bh, mxu_dtype=jnp.bfloat16)
    ref_f32 = gru_cell_reference(x, hidden, wx, bx, wh, bh, mxu_dtype=jnp.float32)
    assert jnp.allclose(hy, ref_bf16, atol=2e-2, rtol=2e-2), "cell mismatch vs bf16 reference"
    assert jnp.allclose(hy, ref_f32, atol=5e-2, rtol=5e-2), "cell mismatch vs f32 reference"

    # ---- fused sequence: time loop inside the kernel grid ---------------------------------
    x_seq = jax.random.normal(ks, (seq_len, batch, input_size), jnp.float32)
    hy_seq = jax.block_until_ready(gru_sequence(x_seq, hidden, weights))
    assert hy_seq.shape == (seq_len, batch, hidden_size)

    h_ref = hidden
    ref_steps = []
    for t in range(seq_len):
        h_ref = gru_cell_reference(x_seq[t], h_ref, wx, bx, wh, bh, mxu_dtype=jnp.bfloat16)
        ref_steps.append(h_ref)
    ref_seq = jnp.stack(ref_steps, axis=0)
    assert jnp.allclose(hy_seq, ref_seq, atol=3e-2, rtol=3e-2), "sequence mismatch vs reference"

    print("KERNEL_OK")
</pallas_src>

<mosaic_0001>
module attributes {stable_mosaic.version = 11 : i64} {
  func.func @_gru_cell_kernel(%arg0: i32, %arg1: memref<16x128xbf16, #tpu.memory_space<vmem>>, %arg2: memref<16x128xf32, #tpu.memory_space<vmem>>, %arg3: memref<128x384xbf16, #tpu.memory_space<vmem>>, %arg4: memref<128x384xbf16, #tpu.memory_space<vmem>>, %arg5: memref<1x384xf32, #tpu.memory_space<vmem>>, %arg6: memref<1x384xf32, #tpu.memory_space<vmem>>, %arg7: memref<16x128xf32, #tpu.memory_space<vmem>>) attributes {dimension_semantics = [#tpu.dimension_semantics<parallel>], iteration_bounds = array<i64: 1>, scalar_prefetch = 0 : i64, scratch_operands = 0 : i64, tpu.core_type = #tpu.core_type<tc>, window_params = [{transform_indices = @transform_0, window_bounds = array<i64: 16, 128>}, {transform_indices = @transform_1, window_bounds = array<i64: 16, 128>}, {pipeline_mode = #tpu.pipeline_mode<synchronous>, transform_indices = @transform_2, window_bounds = array<i64: 128, 384>}, {pipeline_mode = #tpu.pipeline_mode<synchronous>, transform_indices = @transform_3, window_bounds = array<i64: 128, 384>}, {pipeline_mode = #tpu.pipeline_mode<synchronous>, transform_indices = @transform_4, window_bounds = array<i64: 1, 384>}, {pipeline_mode = #tpu.pipeline_mode<synchronous>, transform_indices = @transform_5, window_bounds = array<i64: 1, 384>}, {transform_indices = @transform_6, window_bounds = array<i64: 16, 128>}]} {
    %c0 = arith.constant 0 : index
    %c0_0 = arith.constant 0 : index
    %0 = vector.load %arg2[%c0, %c0_0] : memref<16x128xf32, #tpu.memory_space<vmem>>, vector<16x128xf32>
    %c0_1 = arith.constant 0 : index
    %c0_2 = arith.constant 0 : index
    %1 = vector.load %arg1[%c0_1, %c0_2] : memref<16x128xbf16, #tpu.memory_space<vmem>>, vector<16x128xbf16>
    %c0_3 = arith.constant 0 : index
    %c0_4 = arith.constant 0 : index
    %2 = vector.load %arg3[%c0_3, %c0_4] : memref<128x384xbf16, #tpu.memory_space<vmem>>, vector<128x384xbf16>
    %cst = arith.constant dense<0.000000e+00> : vector<16x384xf32>
    %3 = tpu.matmul %1, %2, %cst {dimension_numbers = #tpu.dot_dimension_numbers<[1], [0], [0], [1], [0, 0, 1, 1], [], []>} : vector<16x128xbf16>, vector<128x384xbf16>, vector<16x384xf32> -> vector<16x384xf32>
    %c0_5 = arith.constant 0 : index
    %c0_6 = arith.constant 0 : index
    %4 = vector.load %arg5[%c0_5, %c0_6] : memref<1x384xf32, #tpu.memory_space<vmem>>, vector<1x384xf32>
    %5 = vector.broadcast %4 : vector<1x384xf32> to vector<16x384xf32>
    %6 = arith.addf %3, %5 : vector<16x384xf32>
    %7 = arith.truncf %0 : vector<16x128xf32> to vector<16x128xbf16>
    %c0_7 = arith.constant 0 : index
    %c0_8 = arith.constant 0 : index
    %8 = vector.load %arg4[%c0_7, %c0_8] : memref<128x384xbf16, #tpu.memory_space<vmem>>, vector<128x384xbf16>
    %cst_9 = arith.constant dense<0.000000e+00> : vector<16x384xf32>
    %9 = tpu.matmul %7, %8, %cst_9 {dimension_numbers = #tpu.dot_dimension_numbers<[1], [0], [0], [1], [0, 0, 1, 1], [], []>} : vector<16x128xbf16>, vector<128x384xbf16>, vector<16x384xf32> -> vector<16x384xf32>
    %c0_10 = arith.constant 0 : index
    %c0_11 = arith.constant 0 : index
    %10 = vector.load %arg6[%c0_10, %c0_11] : memref<1x384xf32, #tpu.memory_space<vmem>>, vector<1x384xf32>
    %11 = vector.broadcast %10 : vector<1x384xf32> to vector<16x384xf32>
    %12 = arith.addf %9, %11 : vector<16x384xf32>
    %13 = vector.extract_strided_slice %6 {offsets = [0, 0], sizes = [16, 128], strides = [1, 1]} : vector<16x384xf32> to vector<16x128xf32>
    %14 = vector.extract_strided_slice %12 {offsets = [0, 0], sizes = [16, 128], strides = [1, 1]} : vector<16x384xf32> to vector<16x128xf32>
    %15 = arith.addf %13, %14 : vector<16x128xf32>
    %cst_12 = arith.constant 0.000000e+00 : f32
    %16 = vector.broadcast %cst_12 : f32 to vector<16x128xf32>
    %17 = arith.subf %16, %15 : vector<16x128xf32>
    %18 = math.exp %17 : vector<16x128xf32>
    %cst_13 = arith.constant 1.000000e+00 : f32
    %19 = vector.broadcast %cst_13 : f32 to vector<16x128xf32>
    %20 = arith.addf %19, %18 : vector<16x128xf32>
    %21 = tpu.reciprocal %20 {approx = true} : vector<16x128xf32> -> vector<16x128xf32>
    %22 = vector.extract_strided_slice %6 {offsets = [0, 128], sizes = [16, 128], strides = [1, 1]} : vector<16x384xf32> to vector<16x128xf32>
    %23 = vector.extract_strided_slice %12 {offsets = [0, 128], sizes = [16, 128], strides = [1, 1]} : vector<16x384xf32> to vector<16x128xf32>
    %24 = arith.addf %22, %23 : vector<16x128xf32>
    %cst_14 = arith.constant 0.000000e+00 : f32
    %25 = vector.broadcast %cst_14 : f32 to vector<16x128xf32>
    %26 = arith.subf %25, %24 : vector<16x128xf32>
    %27 = math.exp %26 : vector<16x128xf32>
    %cst_15 = arith.constant 1.000000e+00 : f32
    %28 = vector.broadcast %cst_15 : f32 to vector<16x128xf32>
    %29 = arith.addf %28, %27 : vector<16x128xf32>
    %30 = tpu.reciprocal %29 {approx = true} : vector<16x128xf32> -> vector<16x128xf32>
    %31 = vector.extract_strided_slice %6 {offsets = [0, 256], sizes = [16, 128], strides = [1, 1]} : vector<16x384xf32> to vector<16x128xf32>
    %32 = vector.extract_strided_slice %12 {offsets = [0, 256], sizes = [16, 128], strides = [1, 1]} : vector<16x384xf32> to vector<16x128xf32>
    %33 = arith.mulf %21, %32 : vector<16x128xf32>
    %34 = arith.addf %31, %33 : vector<16x128xf32>
    %35 = math.tanh %34 : vector<16x128xf32>
    %36 = arith.subf %0, %35 : vector<16x128xf32>
    %37 = arith.mulf %30, %36 : vector<16x128xf32>
    %38 = arith.addf %35, %37 : vector<16x128xf32>
    %c0_16 = arith.constant 0 : index
    %c0_17 = arith.constant 0 : index
    %39 = vector.load %arg7[%c0_16, %c0_17] : memref<16x128xf32, #tpu.memory_space<vmem>>, vector<16x128xf32>
    tpu.vector_store %arg7[%c0_16, %c0_17], %38 {strides = array<i32>} : memref<16x128xf32, #tpu.memory_space<vmem>>, vector<16x128xf32>,
    return
  }
  func.func @transform_0(%arg0: i32) -> (i32, i32) {
    %c0_i32 = arith.constant 0 : i32
    %c0_i32_0 = arith.constant 0 : i32
    return %arg0, %c0_i32 : i32, i32
  }
  func.func @transform_1(%arg0: i32) -> (i32, i32) {
    %c0_i32 = arith.constant 0 : i32
    %c0_i32_0 = arith.constant 0 : i32
    return %arg0, %c0_i32 : i32, i32
  }
  func.func @transform_2(%arg0: i32) -> (i32, i32) {
    %c0_i32 = arith.constant 0 : i32
    %c0_i32_0 = arith.constant 0 : i32
    %c0_i32_1 = arith.constant 0 : i32
    return %c0_i32, %c0_i32_0 : i32, i32
  }
  func.func @transform_3(%arg0: i32) -> (i32, i32) {
    %c0_i32 = arith.constant 0 : i32
    %c0_i32_0 = arith.constant 0 : i32
    %c0_i32_1 = arith.constant 0 : i32
    return %c0_i32, %c0_i32_0 : i32, i32
  }
  func.func @transform_4(%arg0: i32) -> (i32, i32) {
    %c0_i32 = arith.constant 0 : i32
    %c0_i32_0 = arith.constant 0 : i32
    %c0_i32_1 = arith.constant 0 : i32
    return %c0_i32, %c0_i32_0 : i32, i32
  }
  func.func @transform_5(%arg0: i32) -> (i32, i32) {
    %c0_i32 = arith.constant 0 : i32
    %c0_i32_0 = arith.constant 0 : i32
    %c0_i32_1 = arith.constant 0 : i32
    return %c0_i32, %c0_i32_0 : i32, i32
  }
  func.func @transform_6(%arg0: i32) -> (i32, i32) {
    %c0_i32 = arith.constant 0 : i32
    %c0_i32_0 = arith.constant 0 : i32
    return %arg0, %c0_i32 : i32, i32
  }
}

module attributes {stable_mosaic.version = 11 : i64} {
  func.func @_gru_cell_kernel(%arg0: i32, %arg1: memref<16x128xbf16, #tpu.memory_space<vmem>>, %arg2: memref<16x128xf32, #tpu.memory_space<vmem>>, %arg3: memref<128x384xbf16, #tpu.memory_space<vmem>>, %arg4: memref<128x384xbf16, #tpu.memory_space<vmem>>, %arg5: memref<1x384xf32, #tpu.memory_space<vmem>>, %arg6: memref<1x384xf32, #tpu.memory_space<vmem>>, %arg7: memref<16x128xf32, #tpu.memory_space<vmem>>) attributes {dimension_semantics = [#tpu.dimension_semantics<parallel>], iteration_bounds = array<i64: 1>, scalar_prefetch = 0 : i64, scratch_operands = 0 : i64, tpu.core_type = #tpu.core_type<tc>, window_params = [{transform_indices = @transform_0, window_bounds = array<i64: 16, 128>}, {transform_indices = @transform_1, window_bounds = array<i64: 16, 128>}, {pipeline_mode = #tpu.pipeline_mode<synchronous>, transform_indices = @transform_2, window_bounds = array<i64: 128, 384>}, {pipeline_mode = #tpu.pipeline_mode<synchronous>, transform_indices = @transform_3, window_bounds = array<i64: 128, 384>}, {pipeline_mode = #tpu.pipeline_mode<synchronous>, transform_indices = @transform_4, window_bounds = array<i64: 1, 384>}, {pipeline_mode = #tpu.pipeline_mode<synchronous>, transform_indices = @transform_5, window_bounds = array<i64: 1, 384>}, {transform_indices = @transform_6, window_bounds = array<i64: 16, 128>}]} {
    %c0 = arith.constant 0 : index
    %c0_0 = arith.constant 0 : index
    %0 = vector.load %arg2[%c0, %c0_0] : memref<16x128xf32, #tpu.memory_space<vmem>>, vector<16x128xf32>
    %c0_1 = arith.constant 0 : index
    %c0_2 = arith.constant 0 : index
    %1 = vector.load %arg1[%c0_1, %c0_2] : memref<16x128xbf16, #tpu.memory_space<vmem>>, vector<16x128xbf16>
    %c0_3 = arith.constant 0 : index
    %c0_4 = arith.constant 0 : index
    %2 = vector.load %arg3[%c0_3, %c0_4] : memref<128x384xbf16, #tpu.memory_space<vmem>>, vector<128x384xbf16>
    %cst = arith.constant dense<0.000000e+00> : vector<16x384xf32>
    %3 = tpu.matmul %1, %2, %cst {dimension_numbers = #tpu.dot_dimension_numbers<[1], [0], [0], [1], [0, 0, 1, 1], [], []>} : vector<16x128xbf16>, vector<128x384xbf16>, vector<16x384xf32> -> vector<16x384xf32>
    %c0_5 = arith.constant 0 : index
    %c0_6 = arith.constant 0 : index
    %4 = vector.load %arg5[%c0_5, %c0_6] : memref<1x384xf32, #tpu.memory_space<vmem>>, vector<1x384xf32>
    %5 = vector.broadcast %4 : vector<1x384xf32> to vector<16x384xf32>
    %6 = arith.addf %3, %5 : vector<16x384xf32>
    %7 = arith.truncf %0 : vector<16x128xf32> to vector<16x128xbf16>
    %c0_7 = arith.constant 0 : index
    %c0_8 = arith.constant 0 : index
    %8 = vector.load %arg4[%c0_7, %c0_8] : memref<128x384xbf16, #tpu.memory_space<vmem>>, vector<128x384xbf16>
    %cst_9 = arith.constant dense<0.000000e+00> : vector<16x384xf32>
    %9 = tpu.matmul %7, %8, %cst_9 {dimension_numbers = #tpu.dot_dimension_numbers<[1], [0], [0], [1], [0, 0, 1, 1], [], []>} : vector<16x128xbf16>, vector<128x384xbf16>, vector<16x384xf32> -> vector<16x384xf32>
    %c0_10 = arith.constant 0 : index
    %c0_11 = arith.constant 0 : index
    %10 = vector.load %arg6[%c0_10, %c0_11] : memref<1x384xf32, #tpu.memory_space<vmem>>, vector<1x384xf32>
    %11 = vector.broadcast %10 : vector<1x384xf32> to vector<16x384xf32>
    %12 = arith.addf %9, %11 : vector<16x384xf32>
    %13 = vector.extract_strided_slice %6 {offsets = [0, 0], sizes = [16, 128], strides = [1, 1]} : vector<16x384xf32> to vector<16x128xf32>
    %14 = vector.extract_strided_slice %12 {offsets = [0, 0], sizes = [16, 128], strides = [1, 1]} : vector<16x384xf32> to vector<16x128xf32>
    %15 = arith.addf %13, %14 : vector<16x128xf32>
    %cst_12 = arith.constant 0.000000e+00 : f32
    %16 = vector.broadcast %cst_12 : f32 to vector<16x128xf32>
    %17 = arith.subf %16, %15 : vector<16x128xf32>
    %18 = math.exp %17 : vector<16x128xf32>
    %cst_13 = arith.constant 1.000000e+00 : f32
    %19 = vector.broadcast %cst_13 : f32 to vector<16x128xf32>
    %20 = arith.addf %19, %18 : vector<16x128xf32>
    %21 = tpu.reciprocal %20 {approx = true} : vector<16x128xf32> -> vector<16x128xf32>
    %22 = vector.extract_strided_slice %6 {offsets = [0, 128], sizes = [16, 128], strides = [1, 1]} : vector<16x384xf32> to vector<16x128xf32>
    %23 = vector.extract_strided_slice %12 {offsets = [0, 128], sizes = [16, 128], strides = [1, 1]} : vector<16x384xf32> to vector<16x128xf32>
    %24 = arith.addf %22, %23 : vector<16x128xf32>
    %cst_14 = arith.constant 0.000000e+00 : f32
    %25 = vector.broadcast %cst_14 : f32 to vector<16x128xf32>
    %26 = arith.subf %25, %24 : vector<16x128xf32>
    %27 = math.exp %26 : vector<16x128xf32>
    %cst_15 = arith.constant 1.000000e+00 : f32
    %28 = vector.broadcast %cst_15 : f32 to vector<16x128xf32>
    %29 = arith.addf %28, %27 : vector<16x128xf32>
    %30 = tpu.reciprocal %29 {approx = true} : vector<16x128xf32> -> vector<16x128xf32>
    %31 = vector.extract_strided_slice %6 {offsets = [0, 256], sizes = [16, 128], strides = [1, 1]} : vector<16x384xf32> to vector<16x128xf32>
    %32 = vector.extract_strided_slice %12 {offsets = [0, 256], sizes = [16, 128], strides = [1, 1]} : vector<16x384xf32> to vector<16x128xf32>
    %33 = arith.mulf %21, %32 : vector<16x128xf32>
    %34 = arith.addf %31, %33 : vector<16x128xf32>
    %35 = math.tanh %34 : vector<16x128xf32>
    %36 = arith.subf %0, %35 : vector<16x128xf32>
    %37 = arith.mulf %30, %36 : vector<16x128xf32>
    %38 = arith.addf %35, %37 : vector<16x128xf32>
    %c0_16 = arith.constant 0 : index
    %c0_17 = arith.constant 0 : index
    %39 = vector.load %arg7[%c0_16, %c0_17] : memref<16x128xf32, #tpu.memory_space<vmem>>, vector<16x128xf32>
    tpu.vector_store %arg7[%c0_16, %c0_17], %38 {strides = array<i32>} : memref<16x128xf32, #tpu.memory_space<vmem>>, vector<16x128xf32>,
    return
  }
  func.func @transform_0(%arg0: i32) -> (i32, i32) {
    %c0_i32 = arith.constant 0 : i32
    %c0_i32_0 = arith.constant 0 : i32
    return %arg0, %c0_i32 : i32, i32
  }
  func.func @transform_1(%arg0: i32) -> (i32, i32) {
    %c0_i32 = arith.constant 0 : i32
    %c0_i32_0 = arith.constant 0 : i32
    return %arg0, %c0_i32 : i32, i32
  }
  func.func @transform_2(%arg0: i32) -> (i32, i32) {
    %c0_i32 = arith.constant 0 : i32
    %c0_i32_0 = arith.constant 0 : i32
    %c0_i32_1 = arith.constant 0 : i32
    return %c0_i32, %c0_i32_0 : i32, i32
  }
  func.func @transform_3(%arg0: i32) -> (i32, i32) {
    %c0_i32 = arith.constant 0 : i32
    %c0_i32_0 = arith.constant 0 : i32
    %c0_i32_1 = arith.constant 0 : i32
    return %c0_i32, %c0_i32_0 : i32, i32
  }
  func.func @transform_4(%arg0: i32) -> (i32, i32) {
    %c0_i32 = arith.constant 0 : i32
    %c0_i32_0 = arith.constant 0 : i32
    %c0_i32_1 = arith.constant 0 : i32
    return %c0_i32, %c0_i32_0 : i32, i32
  }
  func.func @transform_5(%arg0: i32) -> (i32, i32) {
    %c0_i32 = arith.constant 0 : i32
    %c0_i32_0 = arith.constant 0 : i32
    %c0_i32_1 = arith.constant 0 : i32
    return %c0_i32, %c0_i32_0 : i32, i32
  }
  func.func @transform_6(%arg0: i32) -> (i32, i32) {
    %c0_i32 = arith.constant 0 : i32
    %c0_i32_0 = arith.constant 0 : i32
    return %arg0, %c0_i32 : i32, i32
  }
}

</mosaic_0001>

<bundles_post_ra>
// kernel: tpu_custom_call.1
= control target key start
LH: loop header
LB: loop body
LE: loop exit
PB: predicated region body
PF: predicated region fallthrough
CT: control target
= control target key end

     0   :  { %11 = vsyncpa [#allocation3], 0  ;;  %s1091_s0 = inlined_call_operand.hbm [shape: bf16[16,128], index: 0, kind: input, shape index: {}]   ;;  %s1092_s1 = inlined_call_operand.hbm [shape: f32[16,128], index: 1, kind: input, shape index: {}]   ;;  %s1093_s2 = inlined_call_operand.hbm [shape: bf16[128,384], index: 2, kind: input, shape index: {}]   ;;  %s1094_s3 = inlined_call_operand.hbm [shape: bf16[128,384], index: 3, kind: input, shape index: {}]   ;;  %s1095_s4 = inlined_call_operand.vmem [shape: f32[1,384], index: 4, kind: input, shape index: {}]   ;;  %s1096_s5 = inlined_call_operand.vmem [shape: f32[1,384], index: 5, kind: input, shape index: {}]   ;;  %s1097_s6 = inlined_call_operand.hbm [shape: f32[16,128], index: 6, kind: output, shape index: {}]  }
   0x1   :  { %12 = vsyncpa [#allocation6], 0 }
   0x2   :  { %13 = vsyncpa [#allocation9], 0 }
   0x3   :  { %14 = vsyncpa [#allocation4], 0  ;;  %s984_s21 = smov [#allocation5]  }
   0x4   :  { %s32_s22 = sshll.u32 %s984_s21, 4  ;;  %s33_s22 = int_to_ptr.vmem [resolvable:$true] %s32_s22 }
   0x5   :  { %s884_s23 = scalar_lea.vmem %s33_s22, 256  ;;  %p889_p1 = scmp.lt.s32.totalorder %s33_s22, %s33_s22 }
   0x6   :  { %p885_p0 = scmp.ne.s32.totalorder %s33_s22, %s884_s23  ;;  %p890_p2 = scmp.lt.s32.totalorder %s884_s23, %s884_s23 }
   0x8   :  { %p891_p3 = por %p890_p2, %p889_p1 }
   0xa   :  { %p892_p4 = pnand %p891_p3, %p885_p0 }
   0xc   :  { %895 = shalt.err (!%p892_p4)
}
   0xd   :  { %s985_s24 = smov 128   ;;  %s986_s25 = smov 8  }
   0xe   :  { %38 = dma.hbm_to_vmem [thread:$0]  %s1092_s1, 256, %s33_s22, [#allocation6], %s985_s24, %s985_s24, %s986_s25  }
   0xf   :  { %s987_s28 = smov [#allocation2]  }
  0x10   :  { %s20_s29 = sshll.u32 %s987_s28, 4  ;;  %s21_s29 = int_to_ptr.vmem [resolvable:$true] %s20_s29 }
  0x11   :  { %s904_s30 = scalar_lea.vmem %s21_s29, 128  ;;  %p909_p6 = scmp.lt.s32.totalorder %s21_s29, %s21_s29 }
  0x12   :  { %p905_p5 = scmp.ne.s32.totalorder %s21_s29, %s904_s30  ;;  %p910_p7 = scmp.lt.s32.totalorder %s904_s30, %s904_s30 }
  0x14   :  { %p911_p8 = por %p910_p7, %p909_p6 }
  0x16   :  { %p912_p9 = pnand %p911_p8, %p905_p5 }
  0x18   :  { %915 = shalt.err (!%p912_p9)
}
  0x19   :  { %s988_s7 = smov 64   ;;  %s989_s8 = smov 4  }
  0x1a   :  { %26 = dma.hbm_to_vmem [thread:$0]  %s1091_s0, 128, %s21_s29, [#allocation3], %s988_s7, %s988_s7, %s989_s8  }
  0x1b   :  { %s990_s11 = smov [#allocation7]  }
  0x1c   :  { %s44_s12 = sshll.u32 %s990_s11, 4  ;;  %s45_s12 = int_to_ptr.vmem [resolvable:$true] %s44_s12 }
  0x1d   :  { %s924_s1 = scalar_lea.vmem %s45_s12, 3072  ;;  %p929_p11 = scmp.lt.s32.totalorder %s45_s12, %s45_s12 }
  0x1e   :  { %p925_p10 = scmp.ne.s32.totalorder %s45_s12, %s924_s1  ;;  %p930_p12 = scmp.lt.s32.totalorder %s924_s1, %s924_s1 }
  0x20   :  { %p931_p13 = por %p930_p12, %p929_p11 }
  0x22   :  { %p932_p0 = pnand %p931_p13, %p925_p10 }
  0x24   :  { %935 = shalt.err (!%p932_p0)
}
  0x25   :  { %s991_s13 = smov 192   ;;  %s992_s14 = smov 12  }
  0x26   :  { %50 = dma.hbm_to_vmem [thread:$0]  %s1093_s2, 3072, %s45_s12, [#allocation6], %s991_s13, %s991_s13, %s992_s14  }
  0x27   :  { %s993_s17 = smov [#allocation8]  }
  0x28   :  { %s56_s18 = sshll.u32 %s993_s17, 4  ;;  %s57_s18 = int_to_ptr.vmem [resolvable:$true] %s56_s18 }
  0x29   :  { %s944_s0 = scalar_lea.vmem %s57_s18, 3072  ;;  %p949_p2 = scmp.lt.s32.totalorder %s57_s18, %s57_s18 }
  0x2a   :  { %p945_p1 = scmp.ne.s32.totalorder %s57_s18, %s944_s0  ;;  %p950_p3 = scmp.lt.s32.totalorder %s944_s0, %s944_s0 }
  0x2c   :  { %p951_p4 = por %p950_p3, %p949_p2 }
  0x2e   :  { %p952_p5 = pnand %p951_p4, %p945_p1 }
  0x30   :  { %955 = shalt.err (!%p952_p5)
}
  0x31   :  { %62 = dma.hbm_to_vmem [thread:$0]  %s1094_s3, 3072, %s57_s18, [#allocation9], %s991_s13, %s991_s13, %s992_s14  }
  0x32   :  { %976 = dma.done.wait [#allocation3], 128  }
  0x33   :  { %977 = vsyncadd [#allocation3], 4294967168 }
  0x34   :  { %978 = dma.done.wait [#allocation6], 3328  }
  0x35   :  { %979 = vsyncadd [#allocation6], 4294963968 }
  0x36   :  { %980 = dma.done.wait [#allocation9], 3072  }
  0x37   :  { %981 = vsyncadd [#allocation9], 4294964224  ;;  %v994_v0 = vmov 0.0   ;;  %v995_v1 = vmov 0   ;;  %vm996_vm0 = vmmov 0   ;;  %v816_v25 = vld [vmem:[#allocation2] sm:$0xff]   ;;  %v118_v58 = vlaneseq }
  0x38   :  { %737 = vmatprep.subr.bf16.mxu1 %v994_v0  ;;  %299 = vmatprep.mubr.bf16.mxu0 %v995_v1  ;;  %v791_v2 = vld [vmem:[#allocation7 + $0xac] ss:$12 sps:$4 sm:$0xff]   ;;  %v793_v3 = vld [vmem:[#allocation7 + $0xa8] ss:$12 sps:$4 sm:$0xff]   ;;  %v796_v5 = vld [vmem:[#allocation7 + $0x90] ss:$12 sps:$4 sm:$0xff]  }
  0x39   :  { %753 = vmatprep.mubr.msk.bf16.mxu1 %vm996_vm0, %v994_v0  ;;  %267 = vmatprep.subr.bf16.mxu0 %v791_v2  ;;  %v794_v4 = vld [vmem:[#allocation7 + $0x94] ss:$12 sps:$4 sm:$0xff]   ;;  %v797_v6 = vld [vmem:[#allocation7 + $0x7c] ss:$12 sps:$4 sm:$0xff]   ;;  %v799_v7 = vld [vmem:[#allocation7 + $0x78] ss:$12 sps:$4 sm:$0xff]  }
  0x3a   :  { %268 = vmatpush1.bf16.msra.mxu0 %v793_v3  ;;  %v800_v8 = vld [vmem:[#allocation7 + $0x64] ss:$12 sps:$4 sm:$0xff]   ;;  %v802_v9 = vld [vmem:[#allocation7 + $0x60] ss:$12 sps:$4 sm:$0xff]   ;;  %v805_v13 = vld [vmem:[#allocation7 + $0x48] ss:$12 sps:$4 sm:$0xff]  }
  0x3b   :  { %269 = vmatprep.subr.bf16.mxu0 %v794_v4  ;;  %v815_v10 = vld [vmem:[#allocation7 + $0xb0] ss:$12 sps:$4 sm:$0xff]   ;;  %v803_v11 = vld [vmem:[#allocation7 + $0x4c] ss:$12 sps:$4 sm:$0xff]   ;;  %v806_v14 = vld [vmem:[#allocation7 + $0x34] ss:$12 sps:$4 sm:$0xff]  }
  0x3c   :  { %738 = vmatpush3.bf16.msra.mxu1 %v815_v10  ;;  %v820_v12 = vld [vmem:[#allocation7 + $0x98] ss:$12 sps:$4 sm:$0xff]   ;;  %v824_v15 = vld [vmem:[#allocation7 + $0x80] ss:$12 sps:$4 sm:$0xff]   ;;  %v808_v16 = vld [vmem:[#allocation7 + $0x30] ss:$12 sps:$4 sm:$0xff]  }
  0x3d   :  { %739 = vmatprep.subr.bf16.mxu1 %v994_v0  ;;  %v809_v17 = vld [vmem:[#allocation7 + $0x1c] ss:$12 sps:$4 sm:$0xff]   ;;  %v811_v19 = vld [vmem:[#allocation7 + $0x18] ss:$12 sps:$4 sm:$0xff]   ;;  %v814_v22 = vld [vmem:[#allocation7] ss:$12 sps:$4 sm:$0xff]  }
  0x3e   :  { %270 = vmatpush1.bf16.msra.mxu0 %v796_v5  ;;  %v828_v18 = vld [vmem:[#allocation7 + $0x68] ss:$12 sps:$4 sm:$0xff]   ;;  %v812_v20 = vld [vmem:[#allocation7 + $0x4] ss:$12 sps:$4 sm:$0xff]   ;;  %v819_v23 = vld [vmem:[#allocation8 + $0xac] ss:$12 sps:$4 sm:$0xff]  }
  0x3f   :  { %271 = vmatprep.subr.bf16.mxu0 %v797_v6  ;;  %v832_v21 = vld [vmem:[#allocation7 + $0x50] ss:$12 sps:$4 sm:$0xff]   ;;  %v836_v24 = vld [vmem:[#allocation7 + $0x38] ss:$12 sps:$4 sm:$0xff]   ;;  %v817_v26 = vld [vmem:[#allocation8 + $0xa8] ss:$12 sps:$4 sm:$0xff]  }
  0x40   :  { %740 = vmatpush3.bf16.msra.mxu1 %v820_v12  ;;  %v823_v27 = vld [vmem:[#allocation8 + $0x94] ss:$12 sps:$4 sm:$0xff]   ;;  %v821_v29 = vld [vmem:[#allocation8 + $0x90] ss:$12 sps:$4 sm:$0xff]   ;;  %v825_v32 = vld [vmem:[#allocation8 + $0x78] ss:$12 sps:$4 sm:$0xff]  }
  0x41   :  { %741 = vmatprep.subr.bf16.mxu1 %v994_v0  ;;  %v840_v28 = vld [vmem:[#allocation7 + $0x20] ss:$12 sps:$4 sm:$0xff]   ;;  %v827_v30 = vld [vmem:[#allocation8 + $0x7c] ss:$12 sps:$4 sm:$0xff]   ;;  %v831_v33 = vld [vmem:[#allocation8 + $0x64] ss:$12 sps:$4 sm:$0xff]  }
  0x42   :  { %272 = vmatpush1.bf16.msra.mxu0 %v799_v7  ;;  %v844_v31 = vld [vmem:[#allocation7 + $0x8] ss:$12 sps:$4 sm:$0xff]   ;;  %v848_v34 = vld [vmem:[#allocation8 + $0xb0] ss:$12 sps:$4 sm:$0xff]   ;;  %v829_v35 = vld [vmem:[#allocation8 + $0x60] ss:$12 sps:$4 sm:$0xff]  }
  0x43   :  { %273 = vmatprep.subr.bf16.mxu0 %v800_v8  ;;  %v835_v36 = vld [vmem:[#allocation8 + $0x4c] ss:$12 sps:$4 sm:$0xff]   ;;  %v833_v38 = vld [vmem:[#allocation8 + $0x48] ss:$12 sps:$4 sm:$0xff]   ;;  %v837_v41 = vld [vmem:[#allocation8 + $0x30] ss:$12 sps:$4 sm:$0xff]  }
  0x44   :  { %742 = vmatpush3.bf16.msra.mxu1 %v824_v15  ;;  %v849_v37 = vld [vmem:[#allocation8 + $0x98] ss:$12 sps:$4 sm:$0xff]   ;;  %v839_v39 = vld [vmem:[#allocation8 + $0x34] ss:$12 sps:$4 sm:$0xff]   ;;  %v843_v42 = vld [vmem:[#allocation8 + $0x1c] ss:$12 sps:$4 sm:$0xff]  }
  0x45   :  { %743 = vmatprep.subr.bf16.mxu1 %v994_v0  ;;  %v850_v40 = vld [vmem:[#allocation8 + $0x80] ss:$12 sps:$4 sm:$0xff]   ;;  %v851_v43 = vld [vmem:[#allocation8 + $0x68] ss:$12 sps:$4 sm:$0xff]   ;;  %v841_v44 = vld [vmem:[#allocation8 + $0x18] ss:$12 sps:$4 sm:$0xff]  }
  0x46   :  { %274 = vmatpush1.bf16.msra.mxu0 %v802_v9  ;;  %v847_v45 = vld [vmem:[#allocation8 + $0x4] ss:$12 sps:$4 sm:$0xff]   ;;  %v845_v47 = vld [vmem:[#allocation8] ss:$12 sps:$4 sm:$0xff]   ;;  %v1067_v49 = vld [vmem:[#allocation5 + $0x8] sm:$0xff]  ;;  %v119_v60 = vshrl.u32 %v118_v58, 7 }
  0x47   :  { %275 = vmatprep.subr.bf16.mxu0 %v803_v11  ;;  %v852_v46 = vld [vmem:[#allocation8 + $0x50] ss:$12 sps:$4 sm:$0xff]   ;;  %v853_v50 = vld [vmem:[#allocation8 + $0x38] ss:$12 sps:$4 sm:$0xff]   ;;  %v854_v52 = vld [vmem:[#allocation8 + $0x20] ss:$12 sps:$4 sm:$0xff]  }
  0x48   :  { %744 = vmatpush3.bf16.msra.mxu1 %v828_v18  ;;  %v1065_v48 = vld [vmem:[#allocation5] sm:$0xff]  ;;  %v120_v62 = vsub.s32 0, %v119_v60  ;;  %v116_v63 = vld [vmem:[%s1095_s4] sm:$0x7]  ;;  %v124_v8 = vsub.s32 1, %v119_v60  ;;  %s997_s4 = smov [#allocation10]  }
  0x49   :  { %745 = vmatprep.subr.bf16.mxu1 %v994_v0  ;;  %v351_v51 = vpack.c.bf16 %v1067_v49, %v1065_v48  ;;  %v855_v53 = vld [vmem:[#allocation8 + $0x8] ss:$12 sps:$4 sm:$0xff]  }
  0x4a   :  { %276 = vmatpush1.bf16.msra.mxu0 %v805_v13  ;;  %v121_v2 = vrot.slane %v116_v63, %v120_v62 }
  0x4b   :  { %277 = vmatprep.subr.bf16.mxu0 %v806_v14 }
  0x4c   :  { %746 = vmatpush3.bf16.msra.mxu1 %v832_v21 }
  0x4d   :  { %747 = vmatprep.subr.bf16.mxu1 %v994_v0 }
  0x4e   :  { %278 = vmatpush1.bf16.msra.mxu0 %v808_v16  ;;  %v125_v16 = vrot.slane %v116_v63, %v124_v8 }
  0x4f   :  { %279 = vmatprep.subr.bf16.mxu0 %v809_v17 }
  0x50   :  { %748 = vmatpush3.bf16.msra.mxu1 %v836_v24 }
  0x51   :  { %749 = vmatprep.subr.bf16.mxu1 %v994_v0 }
  0x52   :  { %280 = vmatpush1.bf16.msra.mxu0 %v811_v19 }
  0x53   :  { %281 = vmatprep.subr.bf16.mxu0 %v812_v20 }
  0x54   :  { %750 = vmatpush3.bf16.msra.mxu1 %v840_v28 }
  0x55   :  { %751 = vmatprep.subr.bf16.mxu1 %v994_v0 }
  0x56   :  { %282 = vmatpush1.bf16.msra.mxu0 %v814_v22 }
  0x57   :  { %529 = vmatprep.subr.bf16.mxu0 %v819_v23 }
  0x58   :  { %752 = vmatpush3.bf16.msra.mxu1 %v844_v31 }
  0x59   :  { %300 = vmatmul.mubr.bf16.vlgmr.msra.gmra.mxu0 %v816_v25  ;;  %757 = vmatprep.subr.bf16.mxu1 %v994_v0 }
  0x5a   :  { %530 = vmatpush1.bf16.msra.mxu0 %v817_v26  ;;  %561 = vmatprep.mubr.bf16.mxu0 %v995_v1 }
  0x5b   :  { %531 = vmatprep.subr.bf16.mxu0 %v823_v27  ;;  %754 = vmatmul.mubr.bf16.vlgmr.msra.gmra.mxu1 %v816_v25 }
  0x5c   :  { %758 = vmatpush3.bf16.msra.mxu1 %v848_v34  ;;  %773 = vmatprep.mubr.msk.bf16.mxu1 %vm996_vm0, %v994_v0 }
  0x5d   :  { %759 = vmatprep.subr.bf16.mxu1 %v994_v0 }
  0x5e   :  { %532 = vmatpush1.bf16.msra.mxu0 %v821_v29 }
  0x5f   :  { %533 = vmatprep.subr.bf16.mxu0 %v827_v30 }
  0x60   :  { %760 = vmatpush3.bf16.msra.mxu1 %v849_v37 }
  0x61   :  { %761 = vmatprep.subr.bf16.mxu1 %v994_v0 }
  0x62   :  { %534 = vmatpush1.bf16.msra.mxu0 %v825_v32 }
  0x63   :  { %535 = vmatprep.subr.bf16.mxu0 %v831_v33 }
  0x64   :  { %762 = vmatpush3.bf16.msra.mxu1 %v850_v40  ;;  %v128_v40 = vsub.s32 2, %v119_v60 }
  0x65   :  { %763 = vmatprep.subr.bf16.mxu1 %v994_v0 }
  0x66   :  { %536 = vmatpush1.bf16.msra.mxu0 %v829_v35 }
  0x67   :  { %537 = vmatprep.subr.bf16.mxu0 %v835_v36 }
  0x68   :  { %764 = vmatpush3.bf16.msra.mxu1 %v851_v43 }
  0x69   :  { %765 = vmatprep.subr.bf16.mxu1 %v994_v0 }
  0x6a   :  { %538 = vmatpush1.bf16.msra.mxu0 %v833_v38 }
  0x6b   :  { %539 = vmatprep.subr.bf16.mxu0 %v839_v39 }
  0x6c   :  { %766 = vmatpush3.bf16.msra.mxu1 %v852_v46 }
  0x6d   :  { %767 = vmatprep.subr.bf16.mxu1 %v994_v0 }
  0x6e   :  { %540 = vmatpush1.bf16.msra.mxu0 %v837_v41 }
  0x6f   :  { %541 = vmatprep.subr.bf16.mxu0 %v843_v42  ;;  %v129_v42 = vrot.slane %v116_v63, %v128_v40 }
  0x70   :  { %768 = vmatpush3.bf16.msra.mxu1 %v853_v50 }
  0x71   :  { %769 = vmatprep.subr.bf16.mxu1 %v994_v0 }
  0x72   :  { %542 = vmatpush1.bf16.msra.mxu0 %v841_v44 }
  0x73   :  { %543 = vmatprep.subr.bf16.mxu0 %v847_v45 }
  0x74   :  { %770 = vmatpush3.bf16.msra.mxu1 %v854_v52 }
  0x75   :  { %771 = vmatprep.subr.bf16.mxu1 %v994_v0  ;;  %v384_v0 = vld [vmem:[%s1096_s5] sm:$0x7]  ;;  %s656_s5 = sshll.u32 %s997_s4, 4  ;;  %s657_s5 = int_to_ptr.vmem [resolvable:$true] %s656_s5 }
  0x76   :  { %544 = vmatpush1.bf16.msra.mxu0 %v845_v47  ;;  %v389_v3 = vrot.slane %v384_v0, %v120_v62  ;;  %v393_v11 = vrot.slane %v384_v0, %v124_v8  ;;  %v397_v41 = vrot.slane %v384_v0, %v128_v40  ;;  %s956_s23 = scalar_lea.vmem %s657_s5, 256  ;;  %p961_p7 = scmp.lt.s32.totalorder %s657_s5, %s657_s5 }
  0x77   :  { %p957_p6 = scmp.ne.s32.totalorder %s657_s5, %s956_s23  ;;  %p962_p8 = scmp.lt.s32.totalorder %s956_s23, %s956_s23 }
  0x78   :  { %772 = vmatpush3.bf16.msra.mxu1 %v855_v53 }
  0x79   :  { %562 = vmatmul.mubr.bf16.vlgmr.msra.gmra.mxu0 %v351_v51  ;;  %p963_p9 = por %p962_p8, %p961_p7 }
  0x7b   :  { %774 = vmatmul.mubr.bf16.vlgmr.msra.gmra.mxu1 %v351_v51  ;;  %p964_p10 = pnand %p963_p9, %p957_p6 }
 0x119   :  { %v301_v59 = vpop.f32.mrf.mxu0 }
 0x11a   :  { %v302_v6 = vadd.f32 %v301_v59, %v121_v2 }
 0x11b   :  { %v344_v54 = vpop.f32.mrf.mxu1  ;;  %v303_v61 = vpop.f32.mrf.mxu0 }
 0x11c   :  { %v304_v22 = vadd.f32 %v303_v61, %v125_v16  ;;  %v345_v46 = vadd.f32 %v344_v54, %v129_v42 }
 0x11d   :  { %v755_v55 = vpop.f32.mrf.mxu1  ;;  %v305_v1 = vpop.f32.mrf.mxu0 }
 0x11e   :  { %v306_v13 = vadd.f32 %v305_v1, %v121_v2 }
 0x11f   :  { %v1074_v56 = vpop.f32.mrf.mxu1  ;;  %v307_v4 = vpop.f32.mrf.mxu0 }
 0x120   :  { %v308_v28 = vadd.f32 %v307_v4, %v125_v16 }
 0x121   :  { %v756_v57 = vpop.f32.mrf.mxu1 }
 0x122   :  { %v348_v57 = vadd.f32 %v1074_v56, %v129_v42 }
 0x139   :  { %v563_v5 = vpop.f32.mrf.mxu0 }
 0x13a   :  { %v564_v7 = vadd.f32 %v563_v5, %v389_v3 }
 0x13b   :  { %v565_v9 = vpop.f32.mrf.mxu0  ;;  %v606_v23 = vpop.f32.mrf.mxu1 }
 0x13c   :  { %v613_v10 = vadd.f32 %v564_v7, %v302_v6  ;;  %v566_v19 = vadd.f32 %v565_v9, %v393_v11  ;;  %v607_v43 = vadd.f32 %v606_v23, %v397_v41 }
 0x13d   :  { %v567_v12 = vpop.f32.mrf.mxu0  ;;  %v775_v27 = vpop.f32.mrf.mxu1 }
 0x13e   :  { %v615_v14 = vsub.f32 0.0, %v613_v10  ;;  %v568_v15 = vadd.f32 %v567_v12, %v389_v3  ;;  %v625_v25 = vadd.f32 %v566_v19, %v304_v22 }
 0x13f   :  { %v569_v21 = vpop.f32.mrf.mxu0  ;;  %v609_v29 = vpop.f32.mrf.mxu1 }
 0x140   :  { %v617_v17 = vmul.f32 1.442695, %v615_v14  ;;  %v614_v18 = vadd.f32 %v568_v15, %v306_v13  ;;  %v570_v26 = vadd.f32 %v569_v21, %v393_v11  ;;  %v627_v30 = vsub.f32 0.0, %v625_v25 }
 0x141   :  { %v776_v32 = vpop.f32.mrf.mxu1  ;;  %v610_v53 = vadd.f32 %v609_v29, %v397_v41 }
 0x142   :  { %856 = vpow2.f32 %v617_v17  ;;  %v616_v20 = vsub.f32 0.0, %v614_v18  ;;  %v626_v31 = vadd.f32 %v570_v26, %v308_v28  ;;  %v629_v33 = vmul.f32 1.442695, %v627_v30 }
 0x144   :  { %v619_v24 = vmul.f32 1.442695, %v616_v20  ;;  %v628_v34 = vsub.f32 0.0, %v626_v31 }
 0x146   :  { %858 = vpow2.f32 %v619_v24  ;;  %v631_v37 = vmul.f32 1.442695, %v628_v34 }
 0x147   :  { %860 = vpow2.f32 %v629_v33 }
 0x14f   :  { %v857_v35 = vpop.eup %856 }
 0x150   :  { %v621_v36 = vadd.f32 1.0, %v857_v35 }
 0x152   :  { %862 = vrcp.f32 %v621_v36 }
 0x153   :  { %v859_v38 = vpop.eup %858  ;;  %864 = vpow2.f32 %v631_v37 }
 0x154   :  { %v622_v39 = vadd.f32 1.0, %v859_v38  ;;  %v861_v44 = vpop.eup %860 }
 0x155   :  { %v633_v51 = vadd.f32 1.0, %v861_v44 }
 0x156   :  { %866 = vrcp.f32 %v622_v39 }
 0x15f   :  { %v863_v45 = vpop.eup %862 }
 0x160   :  { %v637_v47 = vmul.f32 %v863_v45, %v607_v43  ;;  %v865_v50 = vpop.eup %864 }
 0x161   :  { %v634_v59 = vadd.f32 1.0, %v865_v50 }
 0x162   :  { %v639_v52 = vadd.f32 %v637_v47, %v345_v46 }
 0x163   :  { %v867_v55 = vpop.eup %866 }
 0x164   :  { %868 = vtanh.f32 %v639_v52  ;;  %v638_v58 = vmul.f32 %v867_v55, %v610_v53 }
 0x165   :  { %870 = vrcp.f32 %v633_v51 }
 0x166   :  { %v640_v60 = vadd.f32 %v638_v58, %v348_v57 }
 0x168   :  { %872 = vtanh.f32 %v640_v60 }
 0x169   :  { %874 = vrcp.f32 %v634_v59 }
 0x171   :  { %v869_v61 = vpop.eup %868 }
 0x172   :  { %v643_v62 = vsub.f32 %v1065_v48, %v869_v61  ;;  %v871_v63 = vpop.eup %870 }
 0x174   :  { %v645_v54 = vmul.f32 %v871_v63, %v643_v62 }
 0x175   :  { %v873_v1 = vpop.eup %872 }
 0x176   :  { %v644_v0 = vsub.f32 %v1067_v49, %v873_v1  ;;  %v647_v2 = vadd.f32 %v869_v61, %v645_v54  ;;  %v875_v3 = vpop.eup %874 }
 0x178   :  { %v646_v56 = vmul.f32 %v875_v3, %v644_v0  ;;  %649 = vst [vmem:[#allocation10] sm:$0xff] %v647_v2 }
 0x17a   :  { %v648_v4 = vadd.f32 %v873_v1, %v646_v56 }
 0x17c   :  { %650 = vst [vmem:[#allocation10 + $0x8] sm:$0xff] %v648_v4 }
 0x17d   :  { %967 = shalt.err (!%p964_p10)
}
 0x17e   :  { %662 = dma.vmem_to_hbm [thread:$0]  %s657_s5, 256, %s1097_s6, [#allocation4], %s985_s24, %s985_s24, %s986_s25  }
 0x17f   :  { %982 = dma.done.wait [#allocation4], 256  }
 0x180   :  { %983 = vsyncadd [#allocation4], 4294967040 }
 0x181   :  { %666 = vsyncpa [#allocation3], 1 }
 0x182   :  { %667 = vsyncpa [#allocation6], 1 }
 0x183   :  { %668 = vsyncpa [#allocation9], 1 }
 0x184   :  { %669 = vsyncpa [#allocation4], 1 }

// kernel: tpu_custom_call.1
= control target key start
LH: loop header
LB: loop body
LE: loop exit
PB: predicated region body
PF: predicated region fallthrough
CT: control target
= control target key end

     0   :  { %11 = vsyncpa [#allocation3], 0  ;;  %s1091_s0 = inlined_call_operand.hbm [shape: bf16[16,128], index: 0, kind: input, shape index: {}]   ;;  %s1092_s1 = inlined_call_operand.hbm [shape: f32[16,128], index: 1, kind: input, shape index: {}]   ;;  %s1093_s2 = inlined_call_operand.hbm [shape: bf16[128,384], index: 2, kind: input, shape index: {}]   ;;  %s1094_s3 = inlined_call_operand.hbm [shape: bf16[128,384], index: 3, kind: input, shape index: {}]   ;;  %s1095_s4 = inlined_call_operand.vmem [shape: f32[1,384], index: 4, kind: input, shape index: {}]   ;;  %s1096_s5 = inlined_call_operand.vmem [shape: f32[1,384], index: 5, kind: input, shape index: {}]   ;;  %s1097_s6 = inlined_call_operand.hbm [shape: f32[16,128], index: 6, kind: output, shape index: {}]  }
   0x1   :  { %12 = vsyncpa [#allocation6], 0 }
   0x2   :  { %13 = vsyncpa [#allocation9], 0 }
   0x3   :  { %14 = vsyncpa [#allocation4], 0  ;;  %s984_s21 = smov [#allocation5]  }
   0x4   :  { %s32_s22 = sshll.u32 %s984_s21, 4  ;;  %s33_s22 = int_to_ptr.vmem [resolvable:$true] %s32_s22 }
   0x5   :  { %s884_s23 = scalar_lea.vmem %s33_s22, 256  ;;  %p889_p1 = scmp.lt.s32.totalorder %s33_s22, %s33_s22 }
   0x6   :  { %p885_p0 = scmp.ne.s32.totalorder %s33_s22, %s884_s23  ;;  %p890_p2 = scmp.lt.s32.totalorder %s884_s23, %s884_s23 }
   0x8   :  { %p891_p3 = por %p890_p2, %p889_p1 }
   0xa   :  { %p892_p4 = pnand %p891_p3, %p885_p0 }
   0xc   :  { %895 = shalt.err (!%p892_p4)
}
   0xd   :  { %s985_s24 = smov 128   ;;  %s986_s25 = smov 8  }
   0xe   :  { %38 = dma.hbm_to_vmem [thread:$0]  %s1092_s1, 256, %s33_s22, [#allocation6], %s985_s24, %s985_s24, %s986_s25  }
   0xf   :  { %s987_s28 = smov [#allocation2]  }
  0x10   :  { %s20_s29 = sshll.u32 %s987_s28, 4  ;;  %s21_s29 = int_to_ptr.vmem [resolvable:$true] %s20_s29 }
  0x11   :  { %s904_s30 = scalar_lea.vmem %s21_s29, 128  ;;  %p909_p6 = scmp.lt.s32.totalorder %s21_s29, %s21_s29 }
  0x12   :  { %p905_p5 = scmp.ne.s32.totalorder %s21_s29, %s904_s30  ;;  %p910_p7 = scmp.lt.s32.totalorder %s904_s30, %s904_s30 }
  0x14   :  { %p911_p8 = por %p910_p7, %p909_p6 }
  0x16   :  { %p912_p9 = pnand %p911_p8, %p905_p5 }
  0x18   :  { %915 = shalt.err (!%p912_p9)
}
  0x19   :  { %s988_s7 = smov 64   ;;  %s989_s8 = smov 4  }
  0x1a   :  { %26 = dma.hbm_to_vmem [thread:$0]  %s1091_s0, 128, %s21_s29, [#allocation3], %s988_s7, %s988_s7, %s989_s8  }
  0x1b   :  { %s990_s11 = smov [#allocation7]  }
  0x1c   :  { %s44_s12 = sshll.u32 %s990_s11, 4  ;;  %s45_s12 = int_to_ptr.vmem [resolvable:$true] %s44_s12 }
  0x1d   :  { %s924_s1 = scalar_lea.vmem %s45_s12, 3072  ;;  %p929_p11 = scmp.lt.s32.totalorder %s45_s12, %s45_s12 }
  0x1e   :  { %p925_p10 = scmp.ne.s32.totalorder %s45_s12, %s924_s1  ;;  %p930_p12 = scmp.lt.s32.totalorder %s924_s1, %s924_s1 }
  0x20   :  { %p931_p13 = por %p930_p12, %p929_p11 }
  0x22   :  { %p932_p0 = pnand %p931_p13, %p925_p10 }
  0x24   :  { %935 = shalt.err (!%p932_p0)
}
  0x25   :  { %s991_s13 = smov 192   ;;  %s992_s14 = smov 12  }
  0x26   :  { %50 = dma.hbm_to_vmem [thread:$0]  %s1093_s2, 3072, %s45_s12, [#allocation6], %s991_s13, %s991_s13, %s992_s14  }
  0x27   :  { %s993_s17 = smov [#allocation8]  }
  0x28   :  { %s56_s18 = sshll.u32 %s993_s17, 4  ;;  %s57_s18 = int_to_ptr.vmem [resolvable:$true] %s56_s18 }
  0x29   :  { %s944_s0 = scalar_lea.vmem %s57_s18, 3072  ;;  %p949_p2 = scmp.lt.s32.totalorder %s57_s18, %s57_s18 }
  0x2a   :  { %p945_p1 = scmp.ne.s32.totalorder %s57_s18, %s944_s0  ;;  %p950_p3 = scmp.lt.s32.totalorder %s944_s0, %s944_s0 }
  0x2c   :  { %p951_p4 = por %p950_p3, %p949_p2 }
  0x2e   :  { %p952_p5 = pnand %p951_p4, %p945_p1 }
  0x30   :  { %955 = shalt.err (!%p952_p5)
}
  0x31   :  { %62 = dma.hbm_to_vmem [thread:$0]  %s1094_s3, 3072, %s57_s18, [#allocation9], %s991_s13, %s991_s13, %s992_s14  }
  0x32   :  { %976 = dma.done.wait [#allocation3], 128  }
  0x33   :  { %977 = vsyncadd [#allocation3], 4294967168 }
  0x34   :  { %978 = dma.done.wait [#allocation6], 3328  }
  0x35   :  { %979 = vsyncadd [#allocation6], 4294963968 }
  0x36   :  { %980 = dma.done.wait [#allocation9], 3072  }
  0x37   :  { %981 = vsyncadd [#allocation9], 4294964224  ;;  %v994_v0 = vmov 0.0   ;;  %v995_v1 = vmov 0   ;;  %vm996_vm0 = vmmov 0   ;;  %v816_v25 = vld [vmem:[#allocation2] sm:$0xff]   ;;  %v118_v58 = vlaneseq }
  0x38   :  { %737 = vmatprep.subr.bf16.mxu1 %v994_v0  ;;  %299 = vmatprep.mubr.bf16.mxu0 %v995_v1  ;;  %v791_v2 = vld [vmem:[#allocation7 + $0xac] ss:$12 sps:$4 sm:$0xff]   ;;  %v793_v3 = vld [vmem:[#allocation7 + $0xa8] ss:$12 sps:$4 sm:$0xff]   ;;  %v796_v5 = vld [vmem:[#allocation7 + $0x90] ss:$12 sps:$4 sm:$0xff]  }
  0x39   :  { %753 = vmatprep.mubr.msk.bf16.mxu1 %vm996_vm0, %v994_v0  ;;  %267 = vmatprep.subr.bf16.mxu0 %v791_v2  ;;  %v794_v4 = vld [vmem:[#allocation7 + $0x94] ss:$12 sps:$4 sm:$0xff]   ;;  %v797_v6 = vld [vmem:[#allocation7 + $0x7c] ss:$12 sps:$4 sm:$0xff]   ;;  %v799_v7 = vld [vmem:[#allocation7 + $0x78] ss:$12 sps:$4 sm:$0xff]  }
  0x3a   :  { %268 = vmatpush1.bf16.msra.mxu0 %v793_v3  ;;  %v800_v8 = vld [vmem:[#allocation7 + $0x64] ss:$12 sps:$4 sm:$0xff]   ;;  %v802_v9 = vld [vmem:[#allocation7 + $0x60] ss:$12 sps:$4 sm:$0xff]   ;;  %v805_v13 = vld [vmem:[#allocation7 + $0x48] ss:$12 sps:$4 sm:$0xff]  }
  0x3b   :  { %269 = vmatprep.subr.bf16.mxu0 %v794_v4  ;;  %v815_v10 = vld [vmem:[#allocation7 + $0xb0] ss:$12 sps:$4 sm:$0xff]   ;;  %v803_v11 = vld [vmem:[#allocation7 + $0x4c] ss:$12 sps:$4 sm:$0xff]   ;;  %v806_v14 = vld [vmem:[#allocation7 + $0x34] ss:$12 sps:$4 sm:$0xff]  }
  0x3c   :  { %738 = vmatpush3.bf16.msra.mxu1 %v815_v10  ;;  %v820_v12 = vld [vmem:[#allocation7 + $0x98] ss:$12 sps:$4 sm:$0xff]   ;;  %v824_v15 = vld [vmem:[#allocation7 + $0x80] ss:$12 sps:$4 sm:$0xff]   ;;  %v808_v16 = vld [vmem:[#allocation7 + $0x30] ss:$12 sps:$4 sm:$0xff]  }
  0x3d   :  { %739 = vmatprep.subr.bf16.mxu1 %v994_v0  ;;  %v809_v17 = vld [vmem:[#allocation7 + $0x1c] ss:$12 sps:$4 sm:$0xff]   ;;  %v811_v19 = vld [vmem:[#allocation7 + $0x18] ss:$12 sps:$4 sm:$0xff]   ;;  %v814_v22 = vld [vmem:[#allocation7] ss:$12 sps:$4 sm:$0xff]  }
  0x3e   :  { %270 = vmatpush1.bf16.msra.mxu0 %v796_v5  ;;  %v828_v18 = vld [vmem:[#allocation7 + $0x68] ss:$12 sps:$4 sm:$0xff]   ;;  %v812_v20 = vld [vmem:[#allocation7 + $0x4] ss:$12 sps:$4 sm:$0xff]   ;;  %v819_v23 = vld [vmem:[#allocation8 + $0xac] ss:$12 sps:$4 sm:$0xff]  }
  0x3f   :  { %271 = vmatprep.subr.bf16.mxu0 %v797_v6  ;;  %v832_v21 = vld [vmem:[#allocation7 + $0x50] ss:$12 sps:$4 sm:$0xff]   ;;  %v836_v24 = vld [vmem:[#allocation7 + $0x38] ss:$12 sps:$4 sm:$0xff]   ;;  %v817_v26 = vld [vmem:[#allocation8 + $0xa8] ss:$12 sps:$4 sm:$0xff]  }
  0x40   :  { %740 = vmatpush3.bf16.msra.mxu1 %v820_v12  ;;  %v823_v27 = vld [vmem:[#allocation8 + $0x94] ss:$12 sps:$4 sm:$0xff]   ;;  %v821_v29 = vld [vmem:[#allocation8 + $0x90] ss:$12 sps:$4 sm:$0xff]   ;;  %v825_v32 = vld [vmem:[#allocation8 + $0x78] ss:$12 sps:$4 sm:$0xff]  }
  0x41   :  { %741 = vmatprep.subr.bf16.mxu1 %v994_v0  ;;  %v840_v28 = vld [vmem:[#allocation7 + $0x20] ss:$12 sps:$4 sm:$0xff]   ;;  %v827_v30 = vld [vmem:[#allocation8 + $0x7c] ss:$12 sps:$4 sm:$0xff]   ;;  %v831_v33 = vld [vmem:[#allocation8 + $0x64] ss:$12 sps:$4 sm:$0xff]  }
  0x42   :  { %272 = vmatpush1.bf16.msra.mxu0 %v799_v7  ;;  %v844_v31 = vld [vmem:[#allocation7 + $0x8] ss:$12 sps:$4 sm:$0xff]   ;;  %v848_v34 = vld [vmem:[#allocation8 + $0xb0] ss:$12 sps:$4 sm:$0xff]   ;;  %v829_v35 = vld [vmem:[#allocation8 + $0x60] ss:$12 sps:$4 sm:$0xff]  }
  0x43   :  { %273 = vmatprep.subr.bf16.mxu0 %v800_v8  ;;  %v835_v36 = vld [vmem:[#allocation8 + $0x4c] ss:$12 sps:$4 sm:$0xff]   ;;  %v833_v38 = vld [vmem:[#allocation8 + $0x48] ss:$12 sps:$4 sm:$0xff]   ;;  %v837_v41 = vld [vmem:[#allocation8 + $0x30] ss:$12 sps:$4 sm:$0xff]  }
  0x44   :  { %742 = vmatpush3.bf16.msra.mxu1 %v824_v15  ;;  %v849_v37 = vld [vmem:[#allocation8 + $0x98] ss:$12 sps:$4 sm:$0xff]   ;;  %v839_v39 = vld [vmem:[#allocation8 + $0x34] ss:$12 sps:$4 sm:$0xff]   ;;  %v843_v42 = vld [vmem:[#allocation8 + $0x1c] ss:$12 sps:$4 sm:$0xff]  }
  0x45   :  { %743 = vmatprep.subr.bf16.mxu1 %v994_v0  ;;  %v850_v40 = vld [vmem:[#allocation8 + $0x80] ss:$12 sps:$4 sm:$0xff]   ;;  %v851_v43 = vld [vmem:[#allocation8 + $0x68] ss:$12 sps:$4 sm:$0xff]   ;;  %v841_v44 = vld [vmem:[#allocation8 + $0x18] ss:$12 sps:$4 sm:$0xff]  }
  0x46   :  { %274 = vmatpush1.bf16.msra.mxu0 %v802_v9  ;;  %v847_v45 = vld [vmem:[#allocation8 + $0x4] ss:$12 sps:$4 sm:$0xff]   ;;  %v845_v47 = vld [vmem:[#allocation8] ss:$12 sps:$4 sm:$0xff]   ;;  %v1067_v49 = vld [vmem:[#allocation5 + $0x8] sm:$0xff]  ;;  %v119_v60 = vshrl.u32 %v118_v58, 7 }
  0x47   :  { %275 = vmatprep.subr.bf16.mxu0 %v803_v11  ;;  %v852_v46 = vld [vmem:[#allocation8 + $0x50] ss:$12 sps:$4 sm:$0xff]   ;;  %v853_v50 = vld [vmem:[#allocation8 + $0x38] ss:$12 sps:$4 sm:$0xff]   ;;  %v854_v52 = vld [vmem:[#allocation8 + $0x20] ss:$12 sps:$4 sm:$0xff]  }
  0x48   :  { %744 = vmatpush3.bf16.msra.mxu1 %v828_v18  ;;  %v1065_v48 = vld [vmem:[#allocation5] sm:$0xff]  ;;  %v120_v62 = vsub.s32 0, %v119_v60  ;;  %v116_v63 = vld [vmem:[%s1095_s4] sm:$0x7]  ;;  %v124_v8 = vsub.s32 1, %v119_v60  ;;  %s997_s4 = smov [#allocation10]  }
  0x49   :  { %745 = vmatprep.subr.bf16.mxu1 %v994_v0  ;;  %v351_v51 = vpack.c.bf16 %v1067_v49, %v1065_v48  ;;  %v855_v53 = vld [vmem:[#allocation8 + $0x8] ss:$12 sps:$4 sm:$0xff]  }
  0x4a   :  { %276 = vmatpush1.bf16.msra.mxu0 %v805_v13  ;;  %v121_v2 = vrot.slane %v116_v63, %v120_v62 }
  0x4b   :  { %277 = vmatprep.subr.bf16.mxu0 %v806_v14 }
  0x4c   :  { %746 = vmatpush3.bf16.msra.mxu1 %v832_v21 }
  0x4d   :  { %747 = vmatprep.subr.bf16.mxu1 %v994_v0 }
  0x4e   :  { %278 = vmatpush1.bf16.msra.mxu0 %v808_v16  ;;  %v125_v16 = vrot.slane %v116_v63, %v124_v8 }
  0x4f   :  { %279 = vmatprep.subr.bf16.mxu0 %v809_v17 }
  0x50   :  { %748 = vmatpush3.bf16.msra.mxu1 %v836_v24 }
  0x51   :  { %749 = vmatprep.subr.bf16.mxu1 %v994_v0 }
  0x52   :  { %280 = vmatpush1.bf16.msra.mxu0 %v811_v19 }
  0x53   :  { %281 = vmatprep.subr.bf16.mxu0 %v812_v20 }
  0x54   :  { %750 = vmatpush3.bf16.msra.mxu1 %v840_v28 }
  0x55   :  { %751 = vmatprep.subr.bf16.mxu1 %v994_v0 }
  0x56   :  { %282 = vmatpush1.bf16.msra.mxu0 %v814_v22 }
  0x57   :  { %529 = vmatprep.subr.bf16.mxu0 %v819_v23 }
  0x58   :  { %752 = vmatpush3.bf16.msra.mxu1 %v844_v31 }
  0x59   :  { %300 = vmatmul.mubr.bf16.vlgmr.msra.gmra.mxu0 %v816_v25  ;;  %757 = vmatprep.subr.bf16.mxu1 %v994_v0 }
  0x5a   :  { %530 = vmatpush1.bf16.msra.mxu0 %v817_v26  ;;  %561 = vmatprep.mubr.bf16.mxu0 %v995_v1 }
  0x5b   :  { %531 = vmatprep.subr.bf16.mxu0 %v823_v27  ;;  %754 = vmatmul.mubr.bf16.vlgmr.msra.gmra.mxu1 %v816_v25 }
  0x5c   :  { %758 = vmatpush3.bf16.msra.mxu1 %v848_v34  ;;  %773 = vmatprep.mubr.msk.bf16.mxu1 %vm996_vm0, %v994_v0 }
  0x5d   :  { %759 = vmatprep.subr.bf16.mxu1 %v994_v0 }
  0x5e   :  { %532 = vmatpush1.bf16.msra.mxu0 %v821_v29 }
  0x5f   :  { %533 = vmatprep.subr.bf16.mxu0 %v827_v30 }
  0x60   :  { %760 = vmatpush3.bf16.msra.mxu1 %v849_v37 }
  0x61   :  { %761 = vmatprep.subr.bf16.mxu1 %v994_v0 }
  0x62   :  { %534 = vmatpush1.bf16.msra.mxu0 %v825_v32 }
  0x63   :  { %535 = vmatprep.subr.bf16.mxu0 %v831_v33 }
  0x64   :  { %762 = vmatpush3.bf16.msra.mxu1 %v850_v40  ;;  %v128_v40 = vsub.s32 2, %v119_v60 }
  0x65   :  { %763 = vmatprep.subr.bf16.mxu1 %v994_v0 }
  0x66   :  { %536 = vmatpush1.bf16.msra.mxu0 %v829_v35 }
  0x67   :  { %537 = vmatprep.subr.bf16.mxu0 %v835_v36 }
  0x68   :  { %764 = vmatpush3.bf16.msra.mxu1 %v851_v43 }
  0x69   :  { %765 = vmatprep.subr.bf16.mxu1 %v994_v0 }
  0x6a   :  { %538 = vmatpush1.bf16.msra.mxu0 %v833_v38 }
  0x6b   :  { %539 = vmatprep.subr.bf16.mxu0 %v839_v39 }
  0x6c   :  { %766 = vmatpush3.bf16.msra.mxu1 %v852_v46 }
  0x6d   :  { %767 = vmatprep.subr.bf16.mxu1 %v994_v0 }
  0x6e   :  { %540 = vmatpush1.bf16.msra.mxu0 %v837_v41 }
  0x6f   :  { %541 = vmatprep.subr.bf16.mxu0 %v843_v42  ;;  %v129_v42 = vrot.slane %v116_v63, %v128_v40 }
  0x70   :  { %768 = vmatpush3.bf16.msra.mxu1 %v853_v50 }
  0x71   :  { %769 = vmatprep.subr.bf16.mxu1 %v994_v0 }
  0x72   :  { %542 = vmatpush1.bf16.msra.mxu0 %v841_v44 }
  0x73   :  { %543 = vmatprep.subr.bf16.mxu0 %v847_v45 }
  0x74   :  { %770 = vmatpush3.bf16.msra.mxu1 %v854_v52 }
  0x75   :  { %771 = vmatprep.subr.bf16.mxu1 %v994_v0  ;;  %v384_v0 = vld [vmem:[%s1096_s5] sm:$0x7]  ;;  %s656_s5 = sshll.u32 %s997_s4, 4  ;;  %s657_s5 = int_to_ptr.vmem [resolvable:$true] %s656_s5 }
  0x76   :  { %544 = vmatpush1.bf16.msra.mxu0 %v845_v47  ;;  %v389_v3 = vrot.slane %v384_v0, %v120_v62  ;;  %v393_v11 = vrot.slane %v384_v0, %v124_v8  ;;  %v397_v41 = vrot.slane %v384_v0, %v128_v40  ;;  %s956_s23 = scalar_lea.vmem %s657_s5, 256  ;;  %p961_p7 = scmp.lt.s32.totalorder %s657_s5, %s657_s5 }
  0x77   :  { %p957_p6 = scmp.ne.s32.totalorder %s657_s5, %s956_s23  ;;  %p962_p8 = scmp.lt.s32.totalorder %s956_s23, %s956_s23 }
  0x78   :  { %772 = vmatpush3.bf16.msra.mxu1 %v855_v53 }
  0x79   :  { %562 = vmatmul.mubr.bf16.vlgmr.msra.gmra.mxu0 %v351_v51  ;;  %p963_p9 = por %p962_p8, %p961_p7 }
  0x7b   :  { %774 = vmatmul.mubr.bf16.vlgmr.msra.gmra.mxu1 %v351_v51  ;;  %p964_p10 = pnand %p963_p9, %p957_p6 }
 0x119   :  { %v301_v59 = vpop.f32.mrf.mxu0 }
 0x11a   :  { %v302_v6 = vadd.f32 %v301_v59, %v121_v2 }
 0x11b   :  { %v344_v54 = vpop.f32.mrf.mxu1  ;;  %v303_v61 = vpop.f32.mrf.mxu0 }
 0x11c   :  { %v304_v22 = vadd.f32 %v303_v61, %v125_v16  ;;  %v345_v46 = vadd.f32 %v344_v54, %v129_v42 }
 0x11d   :  { %v755_v55 = vpop.f32.mrf.mxu1  ;;  %v305_v1 = vpop.f32.mrf.mxu0 }
 0x11e   :  { %v306_v13 = vadd.f32 %v305_v1, %v121_v2 }
 0x11f   :  { %v1074_v56 = vpop.f32.mrf.mxu1  ;;  %v307_v4 = vpop.f32.mrf.mxu0 }
 0x120   :  { %v308_v28 = vadd.f32 %v307_v4, %v125_v16 }
 0x121   :  { %v756_v57 = vpop.f32.mrf.mxu1 }
 0x122   :  { %v348_v57 = vadd.f32 %v1074_v56, %v129_v42 }
 0x139   :  { %v563_v5 = vpop.f32.mrf.mxu0 }
 0x13a   :  { %v564_v7 = vadd.f32 %v563_v5, %v389_v3 }
 0x13b   :  { %v565_v9 = vpop.f32.mrf.mxu0  ;;  %v606_v23 = vpop.f32.mrf.mxu1 }
 0x13c   :  { %v613_v10 = vadd.f32 %v564_v7, %v302_v6  ;;  %v566_v19 = vadd.f32 %v565_v9, %v393_v11  ;;  %v607_v43 = vadd.f32 %v606_v23, %v397_v41 }
 0x13d   :  { %v567_v12 = vpop.f32.mrf.mxu0  ;;  %v775_v27 = vpop.f32.mrf.mxu1 }
 0x13e   :  { %v615_v14 = vsub.f32 0.0, %v613_v10  ;;  %v568_v15 = vadd.f32 %v567_v12, %v389_v3  ;;  %v625_v25 = vadd.f32 %v566_v19, %v304_v22 }
 0x13f   :  { %v569_v21 = vpop.f32.mrf.mxu0  ;;  %v609_v29 = vpop.f32.mrf.mxu1 }
 0x140   :  { %v617_v17 = vmul.f32 1.442695, %v615_v14  ;;  %v614_v18 = vadd.f32 %v568_v15, %v306_v13  ;;  %v570_v26 = vadd.f32 %v569_v21, %v393_v11  ;;  %v627_v30 = vsub.f32 0.0, %v625_v25 }
 0x141   :  { %v776_v32 = vpop.f32.mrf.mxu1  ;;  %v610_v53 = vadd.f32 %v609_v29, %v397_v41 }
 0x142   :  { %856 = vpow2.f32 %v617_v17  ;;  %v616_v20 = vsub.f32 0.0, %v614_v18  ;;  %v626_v31 = vadd.f32 %v570_v26, %v308_v28  ;;  %v629_v33 = vmul.f32 1.442695, %v627_v30 }
 0x144   :  { %v619_v24 = vmul.f32 1.442695, %v616_v20  ;;  %v628_v34 = vsub.f32 0.0, %v626_v31 }
 0x146   :  { %858 = vpow2.f32 %v619_v24  ;;  %v631_v37 = vmul.f32 1.442695, %v628_v34 }
 0x147   :  { %860 = vpow2.f32 %v629_v33 }
 0x14f   :  { %v857_v35 = vpop.eup %856 }
 0x150   :  { %v621_v36 = vadd.f32 1.0, %v857_v35 }
 0x152   :  { %862 = vrcp.f32 %v621_v36 }
 0x153   :  { %v859_v38 = vpop.eup %858  ;;  %864 = vpow2.f32 %v631_v37 }
 0x154   :  { %v622_v39 = vadd.f32 1.0, %v859_v38  ;;  %v861_v44 = vpop.eup %860 }
 0x155   :  { %v633_v51 = vadd.f32 1.0, %v861_v44 }
 0x156   :  { %866 = vrcp.f32 %v622_v39 }
 0x15f   :  { %v863_v45 = vpop.eup %862 }
 0x160   :  { %v637_v47 = vmul.f32 %v863_v45, %v607_v43  ;;  %v865_v50 = vpop.eup %864 }
 0x161   :  { %v634_v59 = vadd.f32 1.0, %v865_v50 }
 0x162   :  { %v639_v52 = vadd.f32 %v637_v47, %v345_v46 }
 0x163   :  { %v867_v55 = vpop.eup %866 }
 0x164   :  { %868 = vtanh.f32 %v639_v52  ;;  %v638_v58 = vmul.f32 %v867_v55, %v610_v53 }
 0x165   :  { %870 = vrcp.f32 %v633_v51 }
 0x166   :  { %v640_v60 = vadd.f32 %v638_v58, %v348_v57 }
 0x168   :  { %872 = vtanh.f32 %v640_v60 }
 0x169   :  { %874 = vrcp.f32 %v634_v59 }
 0x171   :  { %v869_v61 = vpop.eup %868 }
 0x172   :  { %v643_v62 = vsub.f32 %v1065_v48, %v869_v61  ;;  %v871_v63 = vpop.eup %870 }
 0x174   :  { %v645_v54 = vmul.f32 %v871_v63, %v643_v62 }
 0x175   :  { %v873_v1 = vpop.eup %872 }
 0x176   :  { %v644_v0 = vsub.f32 %v1067_v49, %v873_v1  ;;  %v647_v2 = vadd.f32 %v869_v61, %v645_v54  ;;  %v875_v3 = vpop.eup %874 }
 0x178   :  { %v646_v56 = vmul.f32 %v875_v3, %v644_v0  ;;  %649 = vst [vmem:[#allocation10] sm:$0xff] %v647_v2 }
 0x17a   :  { %v648_v4 = vadd.f32 %v873_v1, %v646_v56 }
 0x17c   :  { %650 = vst [vmem:[#allocation10 + $0x8] sm:$0xff] %v648_v4 }
 0x17d   :  { %967 = shalt.err (!%p964_p10)
}
 0x17e   :  { %662 = dma.vmem_to_hbm [thread:$0]  %s657_s5, 256, %s1097_s6, [#allocation4], %s985_s24, %s985_s24, %s986_s25  }
 0x17f   :  { %982 = dma.done.wait [#allocation4], 256  }
 0x180   :  { %983 = vsyncadd [#allocation4], 4294967040 }
 0x181   :  { %666 = vsyncpa [#allocation3], 1 }
 0x182   :  { %667 = vsyncpa [#allocation6], 1 }
 0x183   :  { %668 = vsyncpa [#allocation9], 1 }
 0x184   :  { %669 = vsyncpa [#allocation4], 1 }

</bundles_post_ra>
